<compile_context>
chip_gen: v7x
topology: tpu7x:2x2x1
jax: 0.10.0
libtpu: 0.0.40
codegen_flags: <defaults>
</compile_context>

<pallas_src>
import jax
import jax.numpy as jnp
import numpy as np
from jax.experimental import pallas as pl
from jax.experimental.pallas import tpu as pltpu


# ----------------------------- config -----------------------------
class Config:
    NODE_CATEGORY_COUNT = 16
    NODE_EMBEDDING_DIM = 32
    EDGE_FEATURE_DIM = 8
    EDGE_EMBEDDING_DIM = 32
    PE_DIM = 0
    USE_RWSE_PE = False
    GNN_LAYERS = 2
    GNN_HIDDEN_DIM = 32
    GNN_DROPOUT = 0.0        # dropout is identity (eval / p=0)
    USE_RESIDUAL = True
    USE_FFN = True
    USE_BATCHNORM = False
    NUM_CLASSES = 4


CFG = Config()
VMEM_SPEC = pl.BlockSpec(memory_space=pltpu.MemorySpace.VMEM)


# ----------------------------- fused kernel -----------------------------
def _fused_gcn_kernel(node_cat_ref, edge_attr_ref, row_e1_ref, col_e1_ref,
                      row_1e_ref, batch_1n_ref, inv_cnt_ref,
                      emb_ref, we_ref, be_ref, wh_ref, bh_ref,
                      w_adeb_ref, b_adeb_ref, wc_ref,
                      w1_ref, b1_ref, w2_ref, b2_ref,
                      out_ref):
    """Encoder -> L GatedGCN layers -> global mean pool -> head, fully fused."""
    f32, bf16 = jnp.float32, jnp.bfloat16
    num_layers = w_adeb_ref.shape[0]
    H = w_adeb_ref.shape[1]

    cat = node_cat_ref[...]                       # (N, 1) int32
    row_e1 = row_e1_ref[...]                      # (E, 1) int32  destination
    col_e1 = col_e1_ref[...]                      # (E, 1) int32  source
    row_1e = row_1e_ref[...]                      # (1, E) int32  destination (lane-major)
    batch_1n = batch_1n_ref[...]                  # (1, N) int32
    n = cat.shape[0]
    ne = row_e1.shape[0]
    v = emb_ref.shape[0]
    nb = inv_cnt_ref.shape[0]

    # ---- encoder: Embedding lookup (bf16 one-hot @ bf16 table, f32 acc) + edge Linear ----
    node_oh = (jax.lax.broadcasted_iota(jnp.int32, (n, v), 1) == cat).astype(bf16)
    x = jnp.dot(node_oh, emb_ref[...], preferred_element_type=f32)            # (N, H)
    e = jnp.dot(edge_attr_ref[...].astype(bf16), we_ref[...],
                preferred_element_type=f32) + be_ref[...]                     # (E, H)

    # ---- selectors: built once; both orientations constructed directly so the
    #      scatter / pool never contract LHS dim 0 (no in-kernel transposes) ----
    edge_iota = jax.lax.broadcasted_iota(jnp.int32, (ne, n), 1)
    row_oh = (edge_iota == row_e1).astype(bf16)                               # (E, N) gather Dx[row]
    col_oh = (edge_iota == col_e1).astype(bf16)                               # (E, N) gather [Ex|Bx][col]
    row_oh_t = (jax.lax.broadcasted_iota(jnp.int32, (n, ne), 0)
                == row_1e).astype(bf16)                                       # (N, E) scatter-add
    pool_oh_t = (jax.lax.broadcasted_iota(jnp.int32, (nb, n), 0)
                 == batch_1n).astype(bf16)                                    # (B, N) mean-pool

    for l in range(num_layers):                   # static unroll
        w_adeb = w_adeb_ref[l]                    # (H, 4H) bf16, layout [A|D|E|B]
        b_adeb = b_adeb_ref[l]                    # (1, 4H) f32, bC folded into D lanes
        wc = wc_ref[l]                            # (H, H)  bf16
        w1 = w1_ref[l]                            # (H, 2H) bf16
        b1 = b1_ref[l]                            # (1, 2H) f32
        w2 = w2_ref[l]                            # (2H, H) bf16
        b2 = b2_ref[l]                            # (1, H)  f32

        # fused node-side linears -> one lane-dense (N, 4H=128) bf16 matmul
        adeb = jnp.dot(x.astype(bf16), w_adeb, preferred_element_type=f32) + b_adeb
        Ce = jnp.dot(e.astype(bf16), wc, preferred_element_type=f32)          # bias folded into b_adeb

        # full-width (128-lane) gathers of adeb with both endpoint selectors;
        # sub-tile extraction happens once on the f32 results (no payload slices/casts)
        adeb_bf = adeb.astype(bf16)
        adeb_row = jnp.dot(row_oh, adeb_bf, preferred_element_type=f32)        # (E, 4H)
        adeb_col = jnp.dot(col_oh, adeb_bf, preferred_element_type=f32)        # (E, 4H)

        Ax = adeb[:, 0:H]
        e_ij = adeb_row[:, H:2 * H] + adeb_col[:, 2 * H:3 * H] + Ce            # Dx[row]+Ex[col]+Ce
        msg = jax.nn.sigmoid(e_ij) * adeb_col[:, 3 * H:4 * H]                  # gated by Bx[col]

        # scatter-add over destination nodes == plain MXU matmul with (N, E) selector
        aggr = jnp.dot(row_oh_t, msg.astype(bf16), preferred_element_type=f32)  # (N, H)

        x = x + jnp.maximum(Ax + aggr, 0.0)       # ReLU; dropout(p=0)=identity; residual proj=Identity
        e = e + jnp.maximum(e_ij, 0.0)

        # FFN: x + lin2(relu(lin1(x)))
        h = jnp.maximum(jnp.dot(x.astype(bf16), w1, preferred_element_type=f32) + b1, 0.0)
        x = x + jnp.dot(h.astype(bf16), w2, preferred_element_type=f32) + b2

    # ---- global mean pool (precomputed inverse counts) + classification head ----
    pooled = jnp.dot(pool_oh_t, x.astype(bf16), preferred_element_type=f32)    # (B, H)
    mean = pooled * inv_cnt_ref[...]
    out_ref[...] = jnp.dot(mean.astype(bf16), wh_ref[...],
                           preferred_element_type=f32) + bh_ref[...]


# ----------------------------- host-side packing (one-time) -----------------------------
def pack_params(p):
    """Fuse [A|D|E|B], fold bC into the D-lane bias, stack per-layer params along a
    leading L axis, and pre-cast weights to bf16.  Done ONCE, not per forward."""
    bf16 = jnp.bfloat16
    packed = {
        "emb": p["emb"].astype(bf16),
        "we": p["we_t"].astype(bf16),
        "be": p["be"],
        "wh": p["wh_t"].astype(bf16),
        "bh": p["bh"],
    }
    w_adeb, b_adeb, wc, w1, b1, w2, b2 = [], [], [], [], [], [], []
    for lp in p["layers"]:
        w_adeb.append(jnp.concatenate(
            [lp["wA"], lp["wD"], lp["wE"], lp["wB"]], axis=1).astype(bf16))
        # one-hot gather rows sum to exactly 1, so Dx[row] carries (bD + bC) and
        # Ce needs no separate bias add inside the kernel.
        b_adeb.append(jnp.concatenate(
            [lp["bA"], lp["bD"] + lp["bC"], lp["bE"], lp["bB"]], axis=1))
        wc.append(lp["wC"].astype(bf16))
        w1.append(lp["w1"].astype(bf16))
        b1.append(lp["b1"])
        w2.append(lp["w2"].astype(bf16))
        b2.append(lp["b2"])
    packed.update(
        w_adeb=jnp.stack(w_adeb), b_adeb=jnp.stack(b_adeb), wc=jnp.stack(wc),
        w1=jnp.stack(w1), b1=jnp.stack(b1), w2=jnp.stack(w2), b2=jnp.stack(b2))
    return packed


# ----------------------------- wrapper -----------------------------
def model_forward(packed, node_cat, edge_attr, row, col, batch, num_graphs):
    """node_cat (N,), row/col (E,), batch (N,) int32; edge_attr (E, De) f32."""
    N = node_cat.shape[0]
    E = edge_attr.shape[0]
    H = CFG.GNN_HIDDEN_DIM
    C = CFG.NUM_CLASSES
    V = CFG.NODE_CATEGORY_COUNT
    D = CFG.NODE_EMBEDDING_DIM
    De = CFG.EDGE_FEATURE_DIM
    L = CFG.GNN_LAYERS

    # mean-pool silently drops nodes with batch id >= num_graphs; guard on concrete values
    try:
        assert int(jnp.max(batch)) < num_graphs, \
            "all batch ids must be < num_graphs (nodes would be dropped by mean-pool)"
    except (jax.errors.ConcretizationTypeError, jax.errors.TracerIntegerConversionError):
        pass  # under tracing: skip the host-side guard

    counts = jnp.zeros((num_graphs,), jnp.float32).at[batch].add(1.0)
    inv_counts = (1.0 / jnp.maximum(counts, 1.0)).reshape(num_graphs, 1)

    inputs = [node_cat.reshape(N, 1), edge_attr,
              row.reshape(E, 1), col.reshape(E, 1),
              row.reshape(1, E), batch.reshape(1, N), inv_counts,
              packed["emb"], packed["we"], packed["be"], packed["wh"], packed["bh"],
              packed["w_adeb"], packed["b_adeb"], packed["wc"],
              packed["w1"], packed["b1"], packed["w2"], packed["b2"]]

    # rough cost estimate for XLA's scheduler
    flops = 2 * (N * V * D + E * De * H)
    flops += L * 2 * (N * H * 4 * H            # fused [A|D|E|B]
                      + E * H * H              # Ce
                      + 2 * E * N * 4 * H      # two full-width (128-lane) gathers
                      + E * N * H              # scatter-add (row_oh_T @ msg)
                      + N * H * 2 * H + N * 2 * H * H)   # FFN
    flops += 2 * (num_graphs * N * H + num_graphs * H * C)
    bytes_accessed = sum(int(np.prod(a.shape)) * a.dtype.itemsize for a in inputs)
    bytes_accessed += num_graphs * C * 4
    cost = pl.CostEstimate(flops=flops, transcendentals=L * E * H,
                           bytes_accessed=bytes_accessed)

    return pl.pallas_call(
        _fused_gcn_kernel,
        out_shape=jax.ShapeDtypeStruct((num_graphs, C), jnp.float32),
        in_specs=[VMEM_SPEC] * len(inputs),
        out_specs=VMEM_SPEC,
        cost_estimate=cost,
    )(*inputs)


# ----------------------------- params -----------------------------
def init_params(key, cfg):
    keys = iter(jax.random.split(key, 64))

    def w(shape, scale=0.1):
        return scale * jax.random.normal(next(keys), shape, dtype=jnp.float32)

    h = cfg.GNN_HIDDEN_DIM
    params = {
        "emb": w((cfg.NODE_CATEGORY_COUNT, cfg.NODE_EMBEDDING_DIM)),
        "we_t": w((cfg.EDGE_FEATURE_DIM, cfg.EDGE_EMBEDDING_DIM)),
        "be": w((1, cfg.EDGE_EMBEDDING_DIM)),
        "wh_t": w((h, cfg.NUM_CLASSES)),
        "bh": w((1, cfg.NUM_CLASSES)),
        "layers": [],
    }
    for _ in range(cfg.GNN_LAYERS):
        lp = {}
        for name in ("A", "B", "C", "D", "E"):
            lp["w" + name] = w((h, h))
            lp["b" + name] = w((1, h))
        lp["w1"] = w((h, 2 * h))
        lp["b1"] = w((1, 2 * h))
        lp["w2"] = w((2 * h, h))
        lp["b2"] = w((1, h))
        params["layers"].append(lp)
    return params


# ----------------------------- numpy reference (f32, PyTorch semantics) -----------------------------
def reference_numpy(params, node_cat, edge_attr, row, col, batch):
    p = jax.tree_util.tree_map(np.asarray, params)
    nc = np.asarray(node_cat)
    ea = np.asarray(edge_attr)
    r = np.asarray(row)
    c = np.asarray(col)
    b = np.asarray(batch)
    relu = lambda v: np.maximum(v, 0.0)

    x = p["emb"][nc]
    e = ea @ p["we_t"] + p["be"][0]
    for lp in p["layers"]:
        Ax = x @ lp["wA"] + lp["bA"][0]
        Bx = x @ lp["wB"] + lp["bB"][0]
        Ce = e @ lp["wC"] + lp["bC"][0]
        Dx = x @ lp["wD"] + lp["bD"][0]
        Ex = x @ lp["wE"] + lp["bE"][0]
        e_ij = Dx[r] + Ex[c] + Ce
        msg = (1.0 / (1.0 + np.exp(-e_ij))) * Bx[c]
        aggr = np.zeros_like(Ax)
        np.add.at(aggr, r, msg)
        x = x + relu(Ax + aggr)
        e = e + relu(e_ij)
        hdn = relu(x @ lp["w1"] + lp["b1"][0])
        x = x + hdn @ lp["w2"] + lp["b2"][0]
    nb = int(b.max()) + 1
    pooled = np.zeros((nb, x.shape[1]), np.float32)
    np.add.at(pooled, b, x)
    counts = np.bincount(b, minlength=nb).astype(np.float32).reshape(-1, 1)
    mean = pooled / np.maximum(counts, 1.0)
    return mean @ p["wh_t"] + p["bh"][0]


# ----------------------------- main -----------------------------
if __name__ == "__main__":
    N, E, B = 16, 24, 2

    key = jax.random.PRNGKey(0)
    k1, k2, k3, k4, kp = jax.random.split(key, 5)
    node_cat = jax.random.randint(k1, (N,), 0, CFG.NODE_CATEGORY_COUNT, dtype=jnp.int32)
    edge_attr = jax.random.normal(k2, (E, CFG.EDGE_FEATURE_DIM), dtype=jnp.float32)
    row = jax.random.randint(k3, (E,), 0, N, dtype=jnp.int32)   # edge_index[0] (dst)
    col = jax.random.randint(k4, (E,), 0, N, dtype=jnp.int32)   # edge_index[1] (src)
    batch = jnp.concatenate([jnp.zeros((N // 2,), jnp.int32),
                             jnp.ones((N - N // 2,), jnp.int32)])

    params = init_params(kp, CFG)
    packed = pack_params(params)        # one-time host-side packing / bf16 cast

    logits = model_forward(packed, node_cat, edge_attr, row, col, batch, B)
    logits = jax.block_until_ready(logits)

    ref = reference_numpy(params, node_cat, edge_attr, row, col, batch)
    # bf16 MXU path (weights + matmul operands bf16, f32 accumulation) is a
    # deliberate precision/perf trade -> loosened tolerance vs f32 reference.
    if not np.allclose(np.asarray(logits), ref, atol=3e-2, rtol=3e-2):
        raise AssertionError(
            f"mismatch vs reference:\npallas={np.asarray(logits)}\nref={ref}")

    print("KERNEL_OK")
</pallas_src>

<mosaic_0001>
module attributes {stable_mosaic.version = 11 : i64} {
  func.func @_fused_gcn_kernel(%arg0: memref<16x1xi32, #tpu.memory_space<vmem>>, %arg1: memref<24x8xf32, #tpu.memory_space<vmem>>, %arg2: memref<24x1xi32, #tpu.memory_space<vmem>>, %arg3: memref<24x1xi32, #tpu.memory_space<vmem>>, %arg4: memref<1x24xi32, #tpu.memory_space<vmem>>, %arg5: memref<1x16xi32, #tpu.memory_space<vmem>>, %arg6: memref<2x1xf32, #tpu.memory_space<vmem>>, %arg7: memref<16x32xbf16, #tpu.memory_space<vmem>>, %arg8: memref<8x32xbf16, #tpu.memory_space<vmem>>, %arg9: memref<1x32xf32, #tpu.memory_space<vmem>>, %arg10: memref<32x4xbf16, #tpu.memory_space<vmem>>, %arg11: memref<1x4xf32, #tpu.memory_space<vmem>>, %arg12: memref<2x32x128xbf16, #tpu.memory_space<vmem>>, %arg13: memref<2x1x128xf32, #tpu.memory_space<vmem>>, %arg14: memref<2x32x32xbf16, #tpu.memory_space<vmem>>, %arg15: memref<2x32x64xbf16, #tpu.memory_space<vmem>>, %arg16: memref<2x1x64xf32, #tpu.memory_space<vmem>>, %arg17: memref<2x64x32xbf16, #tpu.memory_space<vmem>>, %arg18: memref<2x1x32xf32, #tpu.memory_space<vmem>>, %arg19: memref<2x4xf32, #tpu.memory_space<vmem>>) attributes {dimension_semantics = [], scalar_prefetch = 0 : i64, scratch_operands = 0 : i64, tpu.core_type = #tpu.core_type<tc>} {
    %c0 = arith.constant 0 : index
    %c0_0 = arith.constant 0 : index
    %0 = vector.load %arg0[%c0, %c0_0] : memref<16x1xi32, #tpu.memory_space<vmem>>, vector<16x1xi32>
    %c0_1 = arith.constant 0 : index
    %c0_2 = arith.constant 0 : index
    %1 = vector.load %arg2[%c0_1, %c0_2] : memref<24x1xi32, #tpu.memory_space<vmem>>, vector<24x1xi32>
    %c0_3 = arith.constant 0 : index
    %c0_4 = arith.constant 0 : index
    %2 = vector.load %arg3[%c0_3, %c0_4] : memref<24x1xi32, #tpu.memory_space<vmem>>, vector<24x1xi32>
    %c0_5 = arith.constant 0 : index
    %c0_6 = arith.constant 0 : index
    %3 = vector.load %arg4[%c0_5, %c0_6] : memref<1x24xi32, #tpu.memory_space<vmem>>, vector<1x24xi32>
    %c0_7 = arith.constant 0 : index
    %c0_8 = arith.constant 0 : index
    %4 = vector.load %arg5[%c0_7, %c0_8] : memref<1x16xi32, #tpu.memory_space<vmem>>, vector<1x16xi32>
    %5 = tpu.iota {dimensions = array<i32: 1>} : vector<16x16xi32>
    %6 = vector.broadcast %0 : vector<16x1xi32> to vector<16x16xi32>
    %7 = arith.cmpi eq, %5, %6 : vector<16x16xi32>
    %8 = arith.extui %7 : vector<16x16xi1> to vector<16x16xi32>
    %9 = arith.sitofp %8 : vector<16x16xi32> to vector<16x16xf32>
    %10 = arith.truncf %9 : vector<16x16xf32> to vector<16x16xbf16>
    %c0_9 = arith.constant 0 : index
    %c0_10 = arith.constant 0 : index
    %11 = vector.load %arg7[%c0_9, %c0_10] : memref<16x32xbf16, #tpu.memory_space<vmem>>, vector<16x32xbf16>
    %cst = arith.constant dense<0.000000e+00> : vector<16x32xf32>
    %12 = tpu.matmul %10, %11, %cst {dimension_numbers = #tpu.dot_dimension_numbers<[1], [0], [0], [1], [0, 0, 1, 1], [], []>} : vector<16x16xbf16>, vector<16x32xbf16>, vector<16x32xf32> -> vector<16x32xf32>
    %c0_11 = arith.constant 0 : index
    %c0_12 = arith.constant 0 : index
    %13 = vector.load %arg1[%c0_11, %c0_12] : memref<24x8xf32, #tpu.memory_space<vmem>>, vector<24x8xf32>
    %14 = arith.truncf %13 : vector<24x8xf32> to vector<24x8xbf16>
    %c0_13 = arith.constant 0 : index
    %c0_14 = arith.constant 0 : index
    %15 = vector.load %arg8[%c0_13, %c0_14] : memref<8x32xbf16, #tpu.memory_space<vmem>>, vector<8x32xbf16>
    %cst_15 = arith.constant dense<0.000000e+00> : vector<24x32xf32>
    %16 = tpu.matmul %14, %15, %cst_15 {dimension_numbers = #tpu.dot_dimension_numbers<[1], [0], [0], [1], [0, 0, 1, 1], [], []>} : vector<24x8xbf16>, vector<8x32xbf16>, vector<24x32xf32> -> vector<24x32xf32>
    %c0_16 = arith.constant 0 : index
    %c0_17 = arith.constant 0 : index
    %17 = vector.load %arg9[%c0_16, %c0_17] : memref<1x32xf32, #tpu.memory_space<vmem>>, vector<1x32xf32>
    %18 = vector.broadcast %17 : vector<1x32xf32> to vector<24x32xf32>
    %19 = arith.addf %16, %18 : vector<24x32xf32>
    %20 = tpu.iota {dimensions = array<i32: 1>} : vector<24x16xi32>
    %21 = vector.broadcast %1 : vector<24x1xi32> to vector<24x16xi32>
    %22 = arith.cmpi eq, %20, %21 : vector<24x16xi32>
    %23 = arith.extui %22 : vector<24x16xi1> to vector<24x16xi32>
    %24 = arith.sitofp %23 : vector<24x16xi32> to vector<24x16xf32>
    %25 = arith.truncf %24 : vector<24x16xf32> to vector<24x16xbf16>
    %26 = vector.broadcast %2 : vector<24x1xi32> to vector<24x16xi32>
    %27 = arith.cmpi eq, %20, %26 : vector<24x16xi32>
    %28 = arith.extui %27 : vector<24x16xi1> to vector<24x16xi32>
    %29 = arith.sitofp %28 : vector<24x16xi32> to vector<24x16xf32>
    %30 = arith.truncf %29 : vector<24x16xf32> to vector<24x16xbf16>
    %31 = tpu.iota {dimensions = array<i32: 0>} : vector<16x24xi32>
    %32 = vector.broadcast %3 : vector<1x24xi32> to vector<16x24xi32>
    %33 = arith.cmpi eq, %31, %32 : vector<16x24xi32>
    %34 = arith.extui %33 : vector<16x24xi1> to vector<16x24xi32>
    %35 = arith.sitofp %34 : vector<16x24xi32> to vector<16x24xf32>
    %36 = arith.truncf %35 : vector<16x24xf32> to vector<16x24xbf16>
    %37 = tpu.iota {dimensions = array<i32: 0>} : vector<2x16xi32>
    %38 = vector.broadcast %4 : vector<1x16xi32> to vector<2x16xi32>
    %39 = arith.cmpi eq, %37, %38 : vector<2x16xi32>
    %40 = arith.extui %39 : vector<2x16xi1> to vector<2x16xi32>
    %41 = arith.sitofp %40 : vector<2x16xi32> to vector<2x16xf32>
    %42 = arith.truncf %41 : vector<2x16xf32> to vector<2x16xbf16>
    %c0_18 = arith.constant 0 : index
    %c0_19 = arith.constant 0 : index
    %c0_20 = arith.constant 0 : index
    %43 = vector.load %arg12[%c0_18, %c0_19, %c0_20] : memref<2x32x128xbf16, #tpu.memory_space<vmem>>, vector<1x32x128xbf16>
    %44 = vector.shape_cast %43 : vector<1x32x128xbf16> to vector<32x128xbf16>
    %c0_21 = arith.constant 0 : index
    %c0_22 = arith.constant 0 : index
    %c0_23 = arith.constant 0 : index
    %45 = vector.load %arg13[%c0_21, %c0_22, %c0_23] : memref<2x1x128xf32, #tpu.memory_space<vmem>>, vector<1x1x128xf32>
    %46 = vector.shape_cast %45 : vector<1x1x128xf32> to vector<1x128xf32>
    %c0_24 = arith.constant 0 : index
    %c0_25 = arith.constant 0 : index
    %c0_26 = arith.constant 0 : index
    %47 = vector.load %arg14[%c0_24, %c0_25, %c0_26] : memref<2x32x32xbf16, #tpu.memory_space<vmem>>, vector<1x32x32xbf16>
    %48 = vector.shape_cast %47 : vector<1x32x32xbf16> to vector<32x32xbf16>
    %c0_27 = arith.constant 0 : index
    %c0_28 = arith.constant 0 : index
    %c0_29 = arith.constant 0 : index
    %49 = vector.load %arg15[%c0_27, %c0_28, %c0_29] : memref<2x32x64xbf16, #tpu.memory_space<vmem>>, vector<1x32x64xbf16>
    %50 = vector.shape_cast %49 : vector<1x32x64xbf16> to vector<32x64xbf16>
    %c0_30 = arith.constant 0 : index
    %c0_31 = arith.constant 0 : index
    %c0_32 = arith.constant 0 : index
    %51 = vector.load %arg16[%c0_30, %c0_31, %c0_32] : memref<2x1x64xf32, #tpu.memory_space<vmem>>, vector<1x1x64xf32>
    %52 = vector.shape_cast %51 : vector<1x1x64xf32> to vector<1x64xf32>
    %c0_33 = arith.constant 0 : index
    %c0_34 = arith.constant 0 : index
    %c0_35 = arith.constant 0 : index
    %53 = vector.load %arg17[%c0_33, %c0_34, %c0_35] : memref<2x64x32xbf16, #tpu.memory_space<vmem>>, vector<1x64x32xbf16>
    %54 = vector.shape_cast %53 : vector<1x64x32xbf16> to vector<64x32xbf16>
    %c0_36 = arith.constant 0 : index
    %c0_37 = arith.constant 0 : index
    %c0_38 = arith.constant 0 : index
    %55 = vector.load %arg18[%c0_36, %c0_37, %c0_38] : memref<2x1x32xf32, #tpu.memory_space<vmem>>, vector<1x1x32xf32>
    %56 = vector.shape_cast %55 : vector<1x1x32xf32> to vector<1x32xf32>
    %57 = arith.truncf %12 : vector<16x32xf32> to vector<16x32xbf16>
    %cst_39 = arith.constant dense<0.000000e+00> : vector<16x128xf32>
    %58 = tpu.matmul %57, %44, %cst_39 {dimension_numbers = #tpu.dot_dimension_numbers<[1], [0], [0], [1], [0, 0, 1, 1], [], []>} : vector<16x32xbf16>, vector<32x128xbf16>, vector<16x128xf32> -> vector<16x128xf32>
    %59 = vector.broadcast %46 : vector<1x128xf32> to vector<16x128xf32>
    %60 = arith.addf %58, %59 : vector<16x128xf32>
    %61 = arith.truncf %19 : vector<24x32xf32> to vector<24x32xbf16>
    %cst_40 = arith.constant dense<0.000000e+00> : vector<24x32xf32>
    %62 = tpu.matmul %61, %48, %cst_40 {dimension_numbers = #tpu.dot_dimension_numbers<[1], [0], [0], [1], [0, 0, 1, 1], [], []>} : vector<24x32xbf16>, vector<32x32xbf16>, vector<24x32xf32> -> vector<24x32xf32>
    %63 = arith.truncf %60 : vector<16x128xf32> to vector<16x128xbf16>
    %cst_41 = arith.constant dense<0.000000e+00> : vector<24x128xf32>
    %64 = tpu.matmul %25, %63, %cst_41 {dimension_numbers = #tpu.dot_dimension_numbers<[1], [0], [0], [1], [0, 0, 1, 1], [], []>} : vector<24x16xbf16>, vector<16x128xbf16>, vector<24x128xf32> -> vector<24x128xf32>
    %cst_42 = arith.constant dense<0.000000e+00> : vector<24x128xf32>
    %65 = tpu.matmul %30, %63, %cst_42 {dimension_numbers = #tpu.dot_dimension_numbers<[1], [0], [0], [1], [0, 0, 1, 1], [], []>} : vector<24x16xbf16>, vector<16x128xbf16>, vector<24x128xf32> -> vector<24x128xf32>
    %66 = vector.extract_strided_slice %60 {offsets = [0, 0], sizes = [16, 32], strides = [1, 1]} : vector<16x128xf32> to vector<16x32xf32>
    %67 = vector.extract_strided_slice %64 {offsets = [0, 32], sizes = [24, 32], strides = [1, 1]} : vector<24x128xf32> to vector<24x32xf32>
    %68 = vector.extract_strided_slice %65 {offsets = [0, 64], sizes = [24, 32], strides = [1, 1]} : vector<24x128xf32> to vector<24x32xf32>
    %69 = arith.addf %67, %68 : vector<24x32xf32>
    %70 = arith.addf %69, %62 : vector<24x32xf32>
    %71 = arith.negf %70 : vector<24x32xf32>
    %72 = math.exp %71 : vector<24x32xf32>
    %cst_43 = arith.constant 1.000000e+00 : f32
    %73 = vector.broadcast %cst_43 : f32 to vector<24x32xf32>
    %74 = arith.addf %73, %72 : vector<24x32xf32>
    %75 = arith.divf %73, %74 : vector<24x32xf32>
    %76 = vector.extract_strided_slice %65 {offsets = [0, 96], sizes = [24, 32], strides = [1, 1]} : vector<24x128xf32> to vector<24x32xf32>
    %77 = arith.mulf %75, %76 : vector<24x32xf32>
    %78 = arith.truncf %77 : vector<24x32xf32> to vector<24x32xbf16>
    %cst_44 = arith.constant dense<0.000000e+00> : vector<16x32xf32>
    %79 = tpu.matmul %36, %78, %cst_44 {dimension_numbers = #tpu.dot_dimension_numbers<[1], [0], [0], [1], [0, 0, 1, 1], [], []>} : vector<16x24xbf16>, vector<24x32xbf16>, vector<16x32xf32> -> vector<16x32xf32>
    %80 = arith.addf %66, %79 : vector<16x32xf32>
    %cst_45 = arith.constant 0.000000e+00 : f32
    %81 = vector.broadcast %cst_45 : f32 to vector<16x32xf32>
    %82 = arith.maximumf %80, %81 : vector<16x32xf32>
    %83 = arith.addf %12, %82 : vector<16x32xf32>
    %cst_46 = arith.constant 0.000000e+00 : f32
    %84 = vector.broadcast %cst_46 : f32 to vector<24x32xf32>
    %85 = arith.maximumf %70, %84 : vector<24x32xf32>
    %86 = arith.addf %19, %85 : vector<24x32xf32>
    %87 = arith.truncf %83 : vector<16x32xf32> to vector<16x32xbf16>
    %cst_47 = arith.constant dense<0.000000e+00> : vector<16x64xf32>
    %88 = tpu.matmul %87, %50, %cst_47 {dimension_numbers = #tpu.dot_dimension_numbers<[1], [0], [0], [1], [0, 0, 1, 1], [], []>} : vector<16x32xbf16>, vector<32x64xbf16>, vector<16x64xf32> -> vector<16x64xf32>
    %89 = vector.broadcast %52 : vector<1x64xf32> to vector<16x64xf32>
    %90 = arith.addf %88, %89 : vector<16x64xf32>
    %cst_48 = arith.constant 0.000000e+00 : f32
    %91 = vector.broadcast %cst_48 : f32 to vector<16x64xf32>
    %92 = arith.maximumf %90, %91 : vector<16x64xf32>
    %93 = arith.truncf %92 : vector<16x64xf32> to vector<16x64xbf16>
    %cst_49 = arith.constant dense<0.000000e+00> : vector<16x32xf32>
    %94 = tpu.matmul %93, %54, %cst_49 {dimension_numbers = #tpu.dot_dimension_numbers<[1], [0], [0], [1], [0, 0, 1, 1], [], []>} : vector<16x64xbf16>, vector<64x32xbf16>, vector<16x32xf32> -> vector<16x32xf32>
    %95 = arith.addf %83, %94 : vector<16x32xf32>
    %96 = vector.broadcast %56 : vector<1x32xf32> to vector<16x32xf32>
    %97 = arith.addf %95, %96 : vector<16x32xf32>
    %c1 = arith.constant 1 : index
    %c0_50 = arith.constant 0 : index
    %c0_51 = arith.constant 0 : index
    %98 = vector.load %arg12[%c1, %c0_50, %c0_51] : memref<2x32x128xbf16, #tpu.memory_space<vmem>>, vector<1x32x128xbf16>
    %99 = vector.shape_cast %98 : vector<1x32x128xbf16> to vector<32x128xbf16>
    %c1_52 = arith.constant 1 : index
    %c0_53 = arith.constant 0 : index
    %c0_54 = arith.constant 0 : index
    %100 = vector.load %arg13[%c1_52, %c0_53, %c0_54] : memref<2x1x128xf32, #tpu.memory_space<vmem>>, vector<1x1x128xf32>
    %101 = vector.shape_cast %100 : vector<1x1x128xf32> to vector<1x128xf32>
    %c1_55 = arith.constant 1 : index
    %c0_56 = arith.constant 0 : index
    %c0_57 = arith.constant 0 : index
    %102 = vector.load %arg14[%c1_55, %c0_56, %c0_57] : memref<2x32x32xbf16, #tpu.memory_space<vmem>>, vector<1x32x32xbf16>
    %103 = vector.shape_cast %102 : vector<1x32x32xbf16> to vector<32x32xbf16>
    %c1_58 = arith.constant 1 : index
    %c0_59 = arith.constant 0 : index
    %c0_60 = arith.constant 0 : index
    %104 = vector.load %arg15[%c1_58, %c0_59, %c0_60] : memref<2x32x64xbf16, #tpu.memory_space<vmem>>, vector<1x32x64xbf16>
    %105 = vector.shape_cast %104 : vector<1x32x64xbf16> to vector<32x64xbf16>
    %c1_61 = arith.constant 1 : index
    %c0_62 = arith.constant 0 : index
    %c0_63 = arith.constant 0 : index
    %106 = vector.load %arg16[%c1_61, %c0_62, %c0_63] : memref<2x1x64xf32, #tpu.memory_space<vmem>>, vector<1x1x64xf32>
    %107 = vector.shape_cast %106 : vector<1x1x64xf32> to vector<1x64xf32>
    %c1_64 = arith.constant 1 : index
    %c0_65 = arith.constant 0 : index
    %c0_66 = arith.constant 0 : index
    %108 = vector.load %arg17[%c1_64, %c0_65, %c0_66] : memref<2x64x32xbf16, #tpu.memory_space<vmem>>, vector<1x64x32xbf16>
    %109 = vector.shape_cast %108 : vector<1x64x32xbf16> to vector<64x32xbf16>
    %c1_67 = arith.constant 1 : index
    %c0_68 = arith.constant 0 : index
    %c0_69 = arith.constant 0 : index
    %110 = vector.load %arg18[%c1_67, %c0_68, %c0_69] : memref<2x1x32xf32, #tpu.memory_space<vmem>>, vector<1x1x32xf32>
    %111 = vector.shape_cast %110 : vector<1x1x32xf32> to vector<1x32xf32>
    %112 = arith.truncf %97 : vector<16x32xf32> to vector<16x32xbf16>
    %cst_70 = arith.constant dense<0.000000e+00> : vector<16x128xf32>
    %113 = tpu.matmul %112, %99, %cst_70 {dimension_numbers = #tpu.dot_dimension_numbers<[1], [0], [0], [1], [0, 0, 1, 1], [], []>} : vector<16x32xbf16>, vector<32x128xbf16>, vector<16x128xf32> -> vector<16x128xf32>
    %114 = vector.broadcast %101 : vector<1x128xf32> to vector<16x128xf32>
    %115 = arith.addf %113, %114 : vector<16x128xf32>
    %116 = arith.truncf %86 : vector<24x32xf32> to vector<24x32xbf16>
    %cst_71 = arith.constant dense<0.000000e+00> : vector<24x32xf32>
    %117 = tpu.matmul %116, %103, %cst_71 {dimension_numbers = #tpu.dot_dimension_numbers<[1], [0], [0], [1], [0, 0, 1, 1], [], []>} : vector<24x32xbf16>, vector<32x32xbf16>, vector<24x32xf32> -> vector<24x32xf32>
    %118 = arith.truncf %115 : vector<16x128xf32> to vector<16x128xbf16>
    %cst_72 = arith.constant dense<0.000000e+00> : vector<24x128xf32>
    %119 = tpu.matmul %25, %118, %cst_72 {dimension_numbers = #tpu.dot_dimension_numbers<[1], [0], [0], [1], [0, 0, 1, 1], [], []>} : vector<24x16xbf16>, vector<16x128xbf16>, vector<24x128xf32> -> vector<24x128xf32>
    %cst_73 = arith.constant dense<0.000000e+00> : vector<24x128xf32>
    %120 = tpu.matmul %30, %118, %cst_73 {dimension_numbers = #tpu.dot_dimension_numbers<[1], [0], [0], [1], [0, 0, 1, 1], [], []>} : vector<24x16xbf16>, vector<16x128xbf16>, vector<24x128xf32> -> vector<24x128xf32>
    %121 = vector.extract_strided_slice %115 {offsets = [0, 0], sizes = [16, 32], strides = [1, 1]} : vector<16x128xf32> to vector<16x32xf32>
    %122 = vector.extract_strided_slice %119 {offsets = [0, 32], sizes = [24, 32], strides = [1, 1]} : vector<24x128xf32> to vector<24x32xf32>
    %123 = vector.extract_strided_slice %120 {offsets = [0, 64], sizes = [24, 32], strides = [1, 1]} : vector<24x128xf32> to vector<24x32xf32>
    %124 = arith.addf %122, %123 : vector<24x32xf32>
    %125 = arith.addf %124, %117 : vector<24x32xf32>
    %126 = arith.negf %125 : vector<24x32xf32>
    %127 = math.exp %126 : vector<24x32xf32>
    %cst_74 = arith.constant 1.000000e+00 : f32
    %128 = vector.broadcast %cst_74 : f32 to vector<24x32xf32>
    %129 = arith.addf %128, %127 : vector<24x32xf32>
    %130 = arith.divf %128, %129 : vector<24x32xf32>
    %131 = vector.extract_strided_slice %120 {offsets = [0, 96], sizes = [24, 32], strides = [1, 1]} : vector<24x128xf32> to vector<24x32xf32>
    %132 = arith.mulf %130, %131 : vector<24x32xf32>
    %133 = arith.truncf %132 : vector<24x32xf32> to vector<24x32xbf16>
    %cst_75 = arith.constant dense<0.000000e+00> : vector<16x32xf32>
    %134 = tpu.matmul %36, %133, %cst_75 {dimension_numbers = #tpu.dot_dimension_numbers<[1], [0], [0], [1], [0, 0, 1, 1], [], []>} : vector<16x24xbf16>, vector<24x32xbf16>, vector<16x32xf32> -> vector<16x32xf32>
    %135 = arith.addf %121, %134 : vector<16x32xf32>
    %cst_76 = arith.constant 0.000000e+00 : f32
    %136 = vector.broadcast %cst_76 : f32 to vector<16x32xf32>
    %137 = arith.maximumf %135, %136 : vector<16x32xf32>
    %138 = arith.addf %97, %137 : vector<16x32xf32>
    %139 = arith.truncf %138 : vector<16x32xf32> to vector<16x32xbf16>
    %cst_77 = arith.constant dense<0.000000e+00> : vector<16x64xf32>
    %140 = tpu.matmul %139, %105, %cst_77 {dimension_numbers = #tpu.dot_dimension_numbers<[1], [0], [0], [1], [0, 0, 1, 1], [], []>} : vector<16x32xbf16>, vector<32x64xbf16>, vector<16x64xf32> -> vector<16x64xf32>
    %141 = vector.broadcast %107 : vector<1x64xf32> to vector<16x64xf32>
    %142 = arith.addf %140, %141 : vector<16x64xf32>
    %cst_78 = arith.constant 0.000000e+00 : f32
    %143 = vector.broadcast %cst_78 : f32 to vector<16x64xf32>
    %144 = arith.maximumf %142, %143 : vector<16x64xf32>
    %145 = arith.truncf %144 : vector<16x64xf32> to vector<16x64xbf16>
    %cst_79 = arith.constant dense<0.000000e+00> : vector<16x32xf32>
    %146 = tpu.matmul %145, %109, %cst_79 {dimension_numbers = #tpu.dot_dimension_numbers<[1], [0], [0], [1], [0, 0, 1, 1], [], []>} : vector<16x64xbf16>, vector<64x32xbf16>, vector<16x32xf32> -> vector<16x32xf32>
    %147 = arith.addf %138, %146 : vector<16x32xf32>
    %148 = vector.broadcast %111 : vector<1x32xf32> to vector<16x32xf32>
    %149 = arith.addf %147, %148 : vector<16x32xf32>
    %150 = arith.truncf %149 : vector<16x32xf32> to vector<16x32xbf16>
    %cst_80 = arith.constant dense<0.000000e+00> : vector<2x32xf32>
    %151 = tpu.matmul %42, %150, %cst_80 {dimension_numbers = #tpu.dot_dimension_numbers<[1], [0], [0], [1], [0, 0, 1, 1], [], []>} : vector<2x16xbf16>, vector<16x32xbf16>, vector<2x32xf32> -> vector<2x32xf32>
    %c0_81 = arith.constant 0 : index
    %c0_82 = arith.constant 0 : index
    %152 = vector.load %arg6[%c0_81, %c0_82] : memref<2x1xf32, #tpu.memory_space<vmem>>, vector<2x1xf32>
    %153 = vector.broadcast %152 : vector<2x1xf32> to vector<2x32xf32>
    %154 = arith.mulf %151, %153 : vector<2x32xf32>
    %155 = arith.truncf %154 : vector<2x32xf32> to vector<2x32xbf16>
    %c0_83 = arith.constant 0 : index
    %c0_84 = arith.constant 0 : index
    %156 = vector.load %arg10[%c0_83, %c0_84] : memref<32x4xbf16, #tpu.memory_space<vmem>>, vector<32x4xbf16>
    %cst_85 = arith.constant dense<0.000000e+00> : vector<2x4xf32>
    %157 = tpu.matmul %155, %156, %cst_85 {dimension_numbers = #tpu.dot_dimension_numbers<[1], [0], [0], [1], [0, 0, 1, 1], [], []>} : vector<2x32xbf16>, vector<32x4xbf16>, vector<2x4xf32> -> vector<2x4xf32>
    %c0_86 = arith.constant 0 : index
    %c0_87 = arith.constant 0 : index
    %158 = vector.load %arg11[%c0_86, %c0_87] : memref<1x4xf32, #tpu.memory_space<vmem>>, vector<1x4xf32>
    %159 = vector.broadcast %158 : vector<1x4xf32> to vector<2x4xf32>
    %160 = arith.addf %157, %159 : vector<2x4xf32>
    %c0_88 = arith.constant 0 : index
    %c0_89 = arith.constant 0 : index
    %161 = vector.load %arg19[%c0_88, %c0_89] : memref<2x4xf32, #tpu.memory_space<vmem>>, vector<2x4xf32>
    tpu.vector_store %arg19[%c0_88, %c0_89], %160 {strides = array<i32>} : memref<2x4xf32, #tpu.memory_space<vmem>>, vector<2x4xf32>,
    return
  }
}

</mosaic_0001>

<bundles_post_ra>
// kernel: tpu_custom_call.1
= control target key start
LH: loop header
LB: loop body
LE: loop exit
PB: predicated region body
PF: predicated region fallthrough
CT: control target
= control target key end

     0   :  { %s2304_s0 = inlined_call_operand.vmem [shape: s32[16,1], index: 0, kind: input, shape index: {}]   ;;  %s2305_s1 = inlined_call_operand.vmem [shape: f32[24,8], index: 1, kind: input, shape index: {}]   ;;  %s2306_s2 = inlined_call_operand.vmem [shape: s32[24,1], index: 2, kind: input, shape index: {}]   ;;  %s2307_s3 = inlined_call_operand.vmem [shape: s32[24,1], index: 3, kind: input, shape index: {}]   ;;  %s2308_s4 = inlined_call_operand.vmem [shape: s32[1,24], index: 4, kind: input, shape index: {}]   ;;  %s2309_s5 = inlined_call_operand.vmem [shape: s32[1,16], index: 5, kind: input, shape index: {}]   ;;  %s2310_s6 = inlined_call_operand.vmem [shape: f32[2,1], index: 6, kind: input, shape index: {}]   ;;  %s2311_s7 = inlined_call_operand.vmem [shape: bf16[16,32], index: 7, kind: input, shape index: {}]   ;;  %s2312_s8 = inlined_call_operand.vmem [shape: bf16[8,32], index: 8, kind: input, shape index: {}]   ;;  %s2313_s9 = inlined_call_operand.vmem [shape: f32[1,32], index: 9, kind: input, shape index: {}]   ;;  %s2314_s10 = inlined_call_operand.vmem [shape: bf16[32,4], index: 10, kind: input, shape index: {}]   ;;  %s2315_s11 = inlined_call_operand.vmem [shape: f32[1,4], index: 11, kind: input, shape index: {}]   ;;  %s2316_s12 = inlined_call_operand.vmem [shape: bf16[2,32,128], index: 12, kind: input, shape index: {}]   ;;  %s2317_s13 = inlined_call_operand.vmem [shape: f32[2,1,128], index: 13, kind: input, shape index: {}]   ;;  %s2318_s14 = inlined_call_operand.vmem [shape: bf16[2,32,32], index: 14, kind: input, shape index: {}]   ;;  %s2319_s15 = inlined_call_operand.vmem [shape: bf16[2,32,64], index: 15, kind: input, shape index: {}]   ;;  %s2320_s16 = inlined_call_operand.vmem [shape: f32[2,1,64], index: 16, kind: input, shape index: {}]   ;;  %s2321_s17 = inlined_call_operand.vmem [shape: bf16[2,64,32], index: 17, kind: input, shape index: {}]   ;;  %s2322_s18 = inlined_call_operand.vmem [shape: f32[2,1,32], index: 18, kind: input, shape index: {}]   ;;  %s2323_s19 = inlined_call_operand.hbm [shape: f32[2,4], index: 19, kind: output, shape index: {}]  }
   0x1   :  { %2328 = sst [smem:[#allocation5_spill]] %s2304_s0 }
   0x2   :  { %2329 = sst [smem:[#allocation6_spill]] %s2305_s1 }
   0x3   :  { %2330 = sst [smem:[#allocation7_spill]] %s2306_s2 }
   0x4   :  { %2331 = sst [smem:[#allocation8_spill]] %s2307_s3 }
   0x5   :  { %2332 = sst [smem:[#allocation9_spill]] %s2315_s11 }
   0x6   :  { %s2333_s20 = sld [smem:[#allocation5_spill]]  ;;  %s2334_s11 = sld [smem:[#allocation8_spill]]  ;;  %v1856_v2 = vmov 0   ;;  %v1857_v5 = vmov 0.0   ;;  %v1785_v8 = vld [vmem:[%s2311_s7] sm:$0xff]   ;;  %vm1858_vm0 = vmmov 0  }
   0x7   :  { %1783 = vset.pattern.permute.xlu0 %v1856_v2  ;;  %1784 = vset.pattern.permute.xlu1 %v1856_v2  ;;  %s2335_s28 = sld [smem:[#allocation7_spill]]  ;;  %v147_v10 = vld [vmem:[%s2312_s8] sm:$0xf]  ;;  %vm162_vm1 = vcmask 1043456   ;;  %s2336_s22 = sld [smem:[#allocation6_spill]]  ;;  %vm155_vm2 = vcmask 64512  }
   0x8   :  { %1637 = vmatprep.subr.bf16.mxu0 %v1857_v5  ;;  %1639 = vmatprep.mubr.msk.bf16.mxu0 %vm1858_vm0, %v1857_v5  ;;  %v164_v13 = vsel %vm162_vm1, %v147_v10, 0 }
   0x9   :  { %1638 = vmatpush3.bf16.msra.mxu0 %v1785_v8  ;;  %1775 = vmatprep.subr.msk.bf16.mxu1 %vm162_vm1, %v147_v10 }
   0xa   :  { %1649 = vmatprep.subr.bf16.mxu0 %v1857_v5  ;;  %1644 = vmatpush3.bf16.msra.mxu1 %v164_v13 }
   0xc   :  { %v64_v0 = vld [vmem:[%s2333_s20] sm:$0xff]  ;;  %v65_v3 = vld [vmem:[%s2333_s20 + $0x8] sm:$0xff]  ;;  %v71_v6 = vld [vmem:[%s2334_s11 + $0x10] sm:$0xff] }
   0xd   :  { %v69_v1 = vld [vmem:[%s2334_s11] sm:$0xff]  ;;  %77 = vperm.xlu0 %1783, %v64_v0   ;;  %v70_v4 = vld [vmem:[%s2334_s11 + $0x8] sm:$0xff]  ;;  %v144_v15 = vld [vmem:[%s2336_s22 + $0x10] sm:$0xff] }
   0xe   :  { %235 = vperm.xlu1 %1784, %v69_v1   ;;  %v66_v7 = vld [vmem:[%s2335_s28] sm:$0xff]  ;;  %v67_v9 = vld [vmem:[%s2335_s28 + $0x8] sm:$0xff]  ;;  %v146_v16 = vpack.c.bf16 %v144_v15, %v144_v15 }
   0xf   :  { %v142_v11 = vld [vmem:[%s2336_s22] sm:$0xff]  ;;  %v143_v12 = vld [vmem:[%s2336_s22 + $0x8] sm:$0xff] }
  0x10   :  { %v145_v14 = vpack.c.bf16 %v143_v12, %v142_v11 }
  0x11   :  { %80 = vperm.xlu0 %1783, %v65_v3  }
  0x12   :  { %238 = vperm.xlu1 %1784, %v70_v4   ;;  %1645 = vmatprep.mubr.msk.bf16.mxu1 %vm155_vm2, %v145_v14 }
  0x15   :  { %241 = vperm.xlu0 %1783, %v71_v6  }
  0x16   :  { %215 = vperm.xlu1 %1784, %v66_v7  }
  0x19   :  { %218 = vperm.xlu0 %1783, %v67_v9  }
  0x1a   :  { %24 = vsyncpa [#allocation3], 0  ;;  %1646 = vmatmul.mubr.msk.bf16.vlgmr.msra.gmra.mrb[0].mxu1 %vm155_vm2, %v146_v16  ;;  %v74_v17 = vlaneseq  ;;  %vm97_vm5 = vcmask 130048   ;;  %v1786_v23 = vld [vmem:[%s2316_s12] sm:$0xff]   ;;  %v1787_v25 = vld [vmem:[%s2316_s12 + $0x8] sm:$0xff]   ;;  %vm318_vm8 = vcmask 261120  }
  0x1b   :  { %v68_v27 = vld [vmem:[%s2335_s28 + $0x10] sm:$0xff]  ;;  %v1788_v28 = vld [vmem:[%s2318_s14] sm:$0xff]   ;;  %v1789_v29 = vld [vmem:[%s2318_s14 + $0x8] sm:$0xff]   ;;  %s1860_s2 = smov 96   ;;  %s1861_s23 = smov 64   ;;  %vm609_vm15 = vcmask 195584  }
  0x1c   :  { %v2006_v18 = vand.u32 127, %v74_v17  ;;  %221 = vperm.xlu1 %1784, %v68_v27   ;;  %1657 = vmatprep.subr.bf16.mxu1 %v1788_v28  ;;  %v1485_v30 = vld [vmem:[%s2313_s9] ss:$0 sm:$0xff]  ;;  %s1859_s9 = smov 32   ;;  %vm771_vm2 = vcmask 523264   ;;  %s2337_s29 = sld [smem:[#allocation9_spill]] }
  0x1d   :  { %1658 = vmatpush3.bf16.msra.mxu1 %v1788_v28  ;;  %v1499_v59 = vld [vmem:[%s2317_s13] ss:$0 sm:$0xff]  ;;  %s1862_s0 = smov [#allocation2]  }
  0x1e   :  { %1659 = vmatprep.subr.bf16.mxu1 %v1789_v29  ;;  %s1473_s30 = sshll.u32 %s1862_s0, 4  ;;  %s1474_s30 = int_to_ptr.vmem [resolvable:$true] %s1473_s30 }
  0x1f   :  { %p1837_p1 = scmp.lt.s32.totalorder %s1474_s30, %s1474_s30 }
  0x21   :  { %1660 = vmatpush3.bf16.msra.mxu1 %v1789_v29 }
  0x8c   :  { %v78_v19 = vpop.permute.xlu0 %77 }
  0x8d   :  { %vm82_vm3 = vcmp.eq.s32.totalorder %v2006_v18, %v78_v19  ;;  %v236_v26 = vpop.permute.xlu1 %235 }
  0x8e   :  { %v1481_v21 = vsel %vm82_vm3, 1.0, %v1857_v5  ;;  %vm243_vm6 = vcmp.eq.s32.totalorder %v2006_v18, %v236_v26 }
  0x8f   :  { %v1491_v37 = vsel %vm243_vm6, 1.0, %v1857_v5 }
  0x90   :  { %v81_v20 = vpop.permute.xlu0 %80 }
  0x91   :  { %vm83_vm4 = vcmp.eq.s32.totalorder %v2006_v18, %v81_v20  ;;  %v239_v31 = vpop.permute.xlu1 %238 }
  0x92   :  { %v1482_v22 = vsel %vm83_vm4, 1.0, %v1857_v5  ;;  %vm244_vm7 = vcmp.eq.s32.totalorder %v2006_v18, %v239_v31 }
  0x93   :  { %v88_v24 = vpack.c.bf16 %v1482_v22, %v1481_v21  ;;  %v1492_v38 = vsel %vm244_vm7, 1.0, %v1857_v5 }
  0x94   :  { %v2046_v42 = vpack.c.bf16 %v1492_v38, %v1491_v37  ;;  %v242_v44 = vpop.permute.xlu0 %241 }
  0x95   :  { %1640 = vmatmul.mubr.msk.bf16.vlgmr.msra.gmra.mrb[0].mxu0 %vm97_vm5, %v88_v24  ;;  %v216_v45 = vpop.permute.xlu1 %215  ;;  %vm245_vm11 = vcmp.eq.s32.totalorder %v2006_v18, %v242_v44 }
  0x96   :  { %1650 = vmatpush3.bf16.msra.mxu0 %v1786_v23  ;;  %1653 = vmatprep.mubr.msk.bf16.mxu0 %vm1858_vm0, %v1857_v5  ;;  %vm223_vm9 = vcmp.eq.s32.totalorder %v2006_v18, %v216_v45  ;;  %v1493_v4 = vsel %vm245_vm11, 1.0, %v1857_v5 }
  0x97   :  { %1651 = vmatprep.subr.bf16.mxu0 %v1857_v5  ;;  %v1488_v48 = vsel %vm223_vm9, 1.0, %v1857_v5  ;;  %v2083_v7 = vpack.c.bf16 %v1493_v4, %v1493_v4 }
  0x98   :  { %v219_v46 = vpop.permute.xlu0 %218 }
  0x99   :  { %vm224_vm10 = vcmp.eq.s32.totalorder %v2006_v18, %v219_v46 }
  0x9a   :  { %1652 = vmatpush3.bf16.msra.mxu0 %v1787_v25  ;;  %v1489_v49 = vsel %vm224_vm10, 1.0, %v1857_v5 }
  0x9b   :  { %v2064_v54 = vpack.c.bf16 %v1489_v49, %v1488_v48  ;;  %v222_v61 = vpop.permute.xlu1 %221 }
  0x9c   :  { %vm225_vm12 = vcmp.eq.s32.totalorder %v2006_v18, %v222_v61 }
  0x9d   :  { %v1490_v6 = vsel %vm225_vm12, 1.0, %v1857_v5 }
  0x9e   :  { %v2085_v8 = vpack.c.bf16 %v1490_v6, %v1490_v6 }
  0xed   :  { %v1647_v32 = vpop.f32.mrb[0].mxu1 }
  0xee   :  { %v2036_v33 = vadd.f32 %v1647_v32, %v1485_v30  ;;  %v200_v34 = vpop.f32.mrb[1].mxu1 }
  0xef   :  { %v2038_v35 = vadd.f32 %v1485_v30, %v200_v34  ;;  %v1648_v36 = vpop.f32.mrb[2].mxu1 }
  0xf0   :  { %v203_v39 = vpop.f32.mrb[3].mxu1  ;;  %v364_v41 = vpack.c.bf16 %v2036_v33, %v2036_v33 }
  0xf1   :  { %v2042_v40 = vadd.f32 %v1485_v30, %v203_v39 }
  0xf3   :  { %v363_v43 = vpack.c.bf16 %v2042_v40, %v2038_v35 }
  0xf5   :  { %1661 = vmatprep.mubr.msk.bf16.mxu1 %vm318_vm8, %v363_v43 }
  0xf6   :  { %1662 = vmatmul.mubr.msk.bf16.vlgmr.msra.gmra.mrb[4].mxu1 %vm318_vm8, %v364_v41 }
  0xf7   :  { %1673 = vmatprep.mubr.msk.bf16.mxu1 %vm97_vm5, %v2046_v42 }
 0x168   :  { %v2056_v47 = vpop.f32.mrb[0].mxu0 }
 0x169   :  { %v1641_v50 = vpop.f32.mrb[1].mxu0 }
 0x16a   :  { %v2060_v51 = vpop.f32.mrb[2].mxu0 }
 0x16b   :  { %v299_v52 = vpack.c.bf16 %v2060_v51, %v2056_v47  ;;  %v1642_v53 = vpop.f32.mrb[3].mxu0 }
 0x16d   :  { %1654 = vmatmul.mubr.msk.bf16.vlgmr.msra.gmra.mrb[4].mxu0 %vm318_vm8, %v299_v52 }
 0x16e   :  { %1667 = vmatprep.mubr.msk.bf16.mxu0 %vm97_vm5, %v2064_v54 }
 0x1c9   :  { %v1663_v55 = vpop.f32.mrb[4].mxu1 }
 0x1ca   :  { %v417_v56 = vpop.f32.mrb[5].mxu1 }
 0x1cb   :  { %v1664_v57 = vpop.f32.mrb[6].mxu1  ;;  %558 = vrot.lane.b32.xlu0 %v417_v56, %s1859_s9 }
 0x1cc   :  { %v420_v58 = vpop.f32.mrb[7].mxu1 }
 0x23d   :  { %v559_v18 = vpop.permute.xlu0 %558 }
 0x240   :  { %v356_v60 = vpop.f32.mrb[4].mxu0 }
 0x241   :  { %v1655_v62 = vpop.f32.mrb[5].mxu0  ;;  %v2074_v0 = vadd.f32 %v1499_v59, %v356_v60  ;;  %v2111_v60 = vshrl.u32 %v74_v17, 7 }
 0x242   :  { %v359_v63 = vpop.f32.mrb[6].mxu0  ;;  %v1494_v62 = vld [vmem:[%s2308_s4] ss:$0 sm:$0xff] }
 0x243   :  { %v2077_v1 = vadd.f32 %v1499_v59, %v359_v63  ;;  %v1656_v2 = vpop.f32.mrb[7].mxu0  ;;  %v256_v61 = vadd.s32 8, %v2111_v60  ;;  %vm261_vm13 = vcmp.eq.s32.totalorder %v2111_v60, %v1494_v62 }
 0x244   :  { %v1495_v2 = vsel %vm261_vm13, 1.0, %v1857_v5 }
 0x245   :  { %v431_v3 = vpack.c.bf16 %v2077_v1, %v2074_v0  ;;  %vm262_vm14 = vcmp.eq.s32.totalorder %v256_v61, %v1494_v62 }
 0x247   :  { %1665 = vmatprep.subr.bf16.mxu0 %v431_v3  ;;  %1671 = vmatprep.subr.bf16.mxu1 %v431_v3 }
 0x248   :  { %1666 = vmatpush3.bf16.msra.mxu0 %v431_v3  ;;  %1672 = vmatpush3.bf16.msra.mxu1 %v431_v3  ;;  %v1496_v3 = vsel %vm262_vm14, 1.0, %v1857_v5 }
 0x249   :  { %1677 = vmatprep.subr.bf16.mxu0 %v1857_v5  ;;  %1685 = vmatprep.subr.bf16.mxu1 %v1857_v5  ;;  %v2122_v6 = vpack.c.bf16 %v1496_v3, %v1495_v2 }
 0x24b   :  { %1668 = vmatmul.mubr.msk.bf16.vlgmr.msra.gmra.mrb[8].mxu0 %vm97_vm5, %v2085_v8  ;;  %1674 = vmatmul.mubr.msk.bf16.vlgmr.msra.gmra.mrb[8].mxu1 %vm97_vm5, %v2083_v7 }
 0x24c   :  { %1681 = vmatprep.mubr.msk.bf16.mxu0 %vm1858_vm0, %v1857_v5  ;;  %1689 = vmatprep.mubr.msk.bf16.mxu1 %vm1858_vm0, %v1857_v5 }
 0x31e   :  { %v1669_v9 = vpop.f32.mrb[8].mxu0  ;;  %v1675_v10 = vpop.f32.mrb[8].mxu1 }
 0x31f   :  { %v472_v11 = vpop.f32.mrb[9].mxu0  ;;  %v526_v12 = vpop.f32.mrb[9].mxu1 }
 0x320   :  { %543 = vrot.lane.b32.xlu0 %v526_v12, %s1860_s2  ;;  %v1670_v13 = vpop.f32.mrb[10].mxu0  ;;  %v1676_v14 = vpop.f32.mrb[10].mxu1 }
 0x321   :  { %v475_v15 = vpop.f32.mrb[11].mxu0  ;;  %v529_v16 = vpop.f32.mrb[11].mxu1 }
 0x322   :  { %545 = vrot.lane.b32.xlu1 %v529_v16, %s1860_s2 }
 0x324   :  { %547 = vrot.lane.b32.xlu0 %v1675_v10, %s1860_s2 }
 0x326   :  { %560 = vrot.lane.b32.xlu1 %v420_v58, %s1859_s9 }
 0x328   :  { %588 = vrot.lane.b32.xlu0 %v526_v12, %s1861_s23  ;;  %v1793_v12 = vld [vmem:[%s2321_s17 + $0x8] sm:$0xff]  }
 0x32a   :  { %562 = vrot.lane.b32.xlu1 %v1663_v55, %s1859_s9 }
 0x32c   :  { %592 = vrot.lane.b32.xlu0 %v1675_v10, %s1861_s23  ;;  %v1791_v10 = vld [vmem:[%s2319_s15 + $0x8] sm:$0xff]  }
 0x32e   :  { %590 = vrot.lane.b32.xlu1 %v529_v16, %s1861_s23 }
 0x392   :  { %v544_v19 = vpop.permute.xlu0 %543 }
 0x393   :  { %v552_v20 = vadd.f32 %v544_v19, %v472_v11  ;;  %v1792_v11 = vld [vmem:[%s2321_s17] sm:$0xff]  }
 0x394   :  { %v546_v21 = vpop.permute.xlu1 %545 }
 0x395   :  { %v567_v22 = vadd.f32 %v559_v18, %v552_v20  ;;  %v553_v24 = vadd.f32 %v546_v21, %v475_v15 }
 0x396   :  { %v548_v25 = vpop.permute.xlu0 %547 }
 0x397   :  { %v1511_v23 = vmul.f32 -1.442695, %v567_v22  ;;  %v554_v28 = vadd.f32 %v1669_v9, %v548_v25  ;;  %v663_v57 = vmax.f32 %v567_v22, 0.0  ;;  %v1790_v9 = vld [vmem:[%s2319_s15] sm:$0xff]  }
 0x398   :  { %v561_v26 = vpop.permute.xlu1 %560  ;;  %1686 = vmatpush3.bf16.msra.mxu1 %v1790_v9 }
 0x399   :  { %1808 = vpow2.f32 %v1511_v23  ;;  %v568_v27 = vadd.f32 %v561_v26, %v553_v24  ;;  %1687 = vmatprep.subr.bf16.mxu1 %v1857_v5 }
 0x39a   :  { %v589_v44 = vpop.permute.xlu0 %588 }
 0x39b   :  { %v1512_v29 = vmul.f32 -1.442695, %v568_v27  ;;  %v664_v58 = vmax.f32 %v568_v27, 0.0 }
 0x39c   :  { %v563_v30 = vpop.permute.xlu1 %562  ;;  %1688 = vmatpush3.bf16.msra.mxu1 %v1791_v10 }
 0x39d   :  { %1810 = vpow2.f32 %v1512_v29  ;;  %v569_v31 = vadd.f32 %v563_v30, %v554_v28  ;;  %1705 = vmatprep.subr.bf16.mxu1 %v1857_v5 }
 0x39e   :  { %v593_v53 = vpop.permute.xlu0 %592 }
 0x39f   :  { %v1513_v32 = vmul.f32 -1.442695, %v569_v31  ;;  %v665_v59 = vmax.f32 %v569_v31, 0.0 }
 0x3a0   :  { %v591_v46 = vpop.permute.xlu1 %590 }
 0x3a1   :  { %1812 = vpow2.f32 %v1513_v32 }
 0x3a3   :  { %v1809_v34 = vpop.eup %1808 }
 0x3a4   :  { %v579_v36 = vadd.f32 1.0, %v1809_v34  ;;  %v1796_v34 = vld [vmem:[%s2316_s12 + $0x10] sm:$0xff]  }
 0x3a6   :  { %1814 = vrcp.f32 %v579_v36  ;;  %v1797_v36 = vld [vmem:[%s2316_s12 + $0x18] sm:$0xff]  }
 0x3a7   :  { %v1811_v37 = vpop.eup %1810 }
 0x3a8   :  { %v580_v38 = vadd.f32 1.0, %v1811_v37  ;;  %v1798_v37 = vld [vmem:[%s2318_s14 + $0x10] sm:$0xff]  }
 0x3aa   :  { %1816 = vrcp.f32 %v580_v38 }
 0x3ab   :  { %v1813_v39 = vpop.eup %1812 }
 0x3ac   :  { %v581_v41 = vadd.f32 1.0, %v1813_v39 }
 0x3ae   :  { %1818 = vrcp.f32 %v581_v41 }
 0x3b0   :  { %v1815_v43 = vpop.eup %1814 }
 0x3b1   :  { %v597_v48 = vmul.f32 %v1815_v43, %v589_v44  ;;  %v1524_v44 = vld [vmem:[%s2322_s18] ss:$0 sm:$0xff] }
 0x3b4   :  { %v1817_v45 = vpop.eup %1816 }
 0x3b5   :  { %v598_v49 = vmul.f32 %v1817_v45, %v591_v46 }
 0x3b7   :  { %v600_v50 = vpack.c.bf16 %v598_v49, %v597_v48 }
 0x3b8   :  { %v1819_v52 = vpop.eup %1818 }
 0x3b9   :  { %v599_v55 = vmul.f32 %v1819_v52, %v593_v53  ;;  %604 = vrot.lane.b32.xlu1 %v600_v50, %s1860_s2 }
 0x3bb   :  { %v601_v56 = vpack.c.bf16 %v599_v55, %v599_v55 }
 0x3bd   :  { %669 = vrot.lane.b32.xlu1 %v663_v57, %s1860_s2  ;;  %606 = vrot.lane.b32.xlu0 %v601_v56, %s1860_s2  ;;  %v1799_v56 = vld [vmem:[%s2318_s14 + $0x18] sm:$0xff]  }
 0x3c1   :  { %673 = vrot.lane.b32.xlu1 %v665_v59, %s1860_s2  ;;  %671 = vrot.lane.b32.xlu0 %v664_v58, %s1860_s2 }
 0x42b   :  { %v605_v63 = vpop.permute.xlu1 %604 }
 0x42c   :  { %1678 = vmatpush3.bf16.msra.mxu0 %v605_v63 }
 0x42d   :  { %1679 = vmatprep.subr.bf16.mxu0 %v1857_v5 }
 0x42f   :  { %v607_v4 = vpop.permute.xlu0 %606  ;;  %v670_v43 = vpop.permute.xlu1 %669 }
 0x430   :  { %v614_v17 = vsel %vm162_vm1, %v607_v4, 0  ;;  %v678_v53 = vadd.f32 %v670_v43, %v2038_v35  ;;  %v1548_v35 = vld [vmem:[%s2317_s13 + $0x1] ss:$0 sm:$0xff] }
 0x431   :  { %1680 = vmatpush3.bf16.msra.mxu0 %v614_v17 }
 0x432   :  { %1693 = vmatprep.subr.bf16.mxu0 %v1857_v5 }
 0x433   :  { %v672_v39 = vpop.permute.xlu0 %671  ;;  %v674_v57 = vpop.permute.xlu1 %673 }
 0x434   :  { %1682 = vmatmul.mubr.msk.bf16.vlgmr.msra.gmra.mrb[12].mxu0 %vm609_vm15, %v2122_v6  ;;  %v679_v49 = vadd.f32 %v672_v39, %v2042_v40  ;;  %v680_v40 = vadd.f32 %v674_v57, %v2036_v33 }
 0x435   :  { %1701 = vmatprep.mubr.msk.bf16.mxu0 %vm1858_vm0, %v1857_v5  ;;  %1694 = vmatpush3.bf16.msra.mxu0 %v1792_v11 }
 0x436   :  { %1695 = vmatprep.subr.bf16.mxu0 %v1857_v5  ;;  %v919_v58 = vpack.c.bf16 %v679_v49, %v678_v53  ;;  %v920_v59 = vpack.c.bf16 %v680_v40, %v680_v40  ;;  %v1391_v49 = vld [vmem:[%s2310_s6] sm:$0x3]  ;;  %v1801_v40 = vld [vmem:[%s2319_s15 + $0x18] sm:$0xff]  }
 0x439   :  { %1696 = vmatpush3.bf16.msra.mxu0 %v1793_v12 }
 0x43a   :  { %1697 = vmatprep.subr.bf16.mxu0 %v1857_v5 }
 0x507   :  { %v650_v13 = vpop.f32.mrb[12].mxu0 }
 0x508   :  { %v657_v14 = vadd.f32 %v650_v13, %v2074_v0  ;;  %v1683_v15 = vpop.f32.mrb[13].mxu0  ;;  %v1794_v0 = vld [vmem:[%s2321_s17 + $0x10] sm:$0xff]  }
 0x509   :  { %v653_v16 = vpop.f32.mrb[14].mxu0  ;;  %1698 = vmatpush3.bf16.msra.mxu0 %v1794_v0 }
 0x50a   :  { %v659_v18 = vmax.f32 %v657_v14, 0.0  ;;  %v658_v19 = vadd.f32 %v653_v16, %v2077_v1  ;;  %v1684_v20 = vpop.f32.mrb[15].mxu0  ;;  %1699 = vmatprep.subr.bf16.mxu0 %v1857_v5 }
 0x50c   :  { %v661_v21 = vadd.f32 %v659_v18, %v2056_v47  ;;  %v660_v22 = vmax.f32 %v658_v19, 0.0  ;;  %v1795_v47 = vld [vmem:[%s2321_s17 + $0x18] sm:$0xff]  }
 0x50d   :  { %1700 = vmatpush3.bf16.msra.mxu0 %v1795_v47 }
 0x50e   :  { %v662_v23 = vadd.f32 %v660_v22, %v2060_v51  ;;  %v1515_v51 = vld [vmem:[%s2320_s16] ss:$0 sm:$0xff] }
 0x510   :  { %v681_v24 = vpack.c.bf16 %v662_v23, %v661_v21 }
 0x512   :  { %1690 = vmatmul.mubr.msk.bf16.vlgmr.msra.gmra.mrb[12].mxu1 %vm318_vm8, %v681_v24 }
 0x513   :  { %1709 = vmatprep.mubr.msk.bf16.mxu1 %vm1858_vm0, %v1857_v5  ;;  %1706 = vmatpush3.bf16.msra.mxu1 %v1796_v34 }
 0x514   :  { %1707 = vmatprep.subr.bf16.mxu1 %v1857_v5 }
 0x517   :  { %1708 = vmatpush3.bf16.msra.mxu1 %v1797_v36 }
 0x518   :  { %1713 = vmatprep.subr.bf16.mxu1 %v1798_v37 }
 0x5e5   :  { %v737_v1 = vpop.f32.mrb[12].mxu1 }
 0x5e6   :  { %v738_v25 = vadd.f32 %v1515_v51, %v737_v1  ;;  %v1691_v26 = vpop.f32.mrb[13].mxu1 }
 0x5e7   :  { %v740_v27 = vpop.f32.mrb[14].mxu1 }
 0x5e8   :  { %v741_v28 = vadd.f32 %v1515_v51, %v740_v27  ;;  %v1692_v29 = vpop.f32.mrb[15].mxu1  ;;  %v744_v30 = vmax.f32 %v738_v25, 0.0 }
 0x5ea   :  { %v745_v31 = vmax.f32 %v741_v28, 0.0 }
 0x5ec   :  { %v746_v32 = vpack.c.bf16 %v745_v31, %v744_v30 }
 0x5ee   :  { %1702 = vmatmul.mubr.msk.bf16.vlgmr.msra.gmra.mrb[16].mxu0 %vm771_vm2, %v746_v32 }
 0x5ef   :  { %1723 = vmatprep.mubr.msk.bf16.mxu0 %vm97_vm5, %v2064_v54 }
 0x6c1   :  { %v809_v38 = vpop.f32.mrb[16].mxu0 }
 0x6c2   :  { %v816_v54 = vadd.f32 %v809_v38, %v661_v21  ;;  %v1703_v41 = vpop.f32.mrb[17].mxu0 }
 0x6c3   :  { %v812_v45 = vpop.f32.mrb[18].mxu0 }
 0x6c4   :  { %v817_v46 = vadd.f32 %v812_v45, %v662_v23  ;;  %v1704_v48 = vpop.f32.mrb[19].mxu0  ;;  %v2179_v50 = vadd.f32 %v1524_v44, %v816_v54 }
 0x6c6   :  { %v2181_v52 = vadd.f32 %v1524_v44, %v817_v46 }
 0x6c8   :  { %v856_v55 = vpack.c.bf16 %v2181_v52, %v2179_v50 }
 0x6ca   :  { %1710 = vmatmul.mubr.msk.bf16.vlgmr.msra.gmra.mrb[16].mxu1 %vm318_vm8, %v856_v55 }
 0x6cb   :  { %1714 = vmatpush3.bf16.msra.mxu1 %v1798_v37  ;;  %1717 = vmatprep.mubr.msk.bf16.mxu1 %vm318_vm8, %v919_v58  ;;  %v1800_v58 = vld [vmem:[%s2319_s15 + $0x10] sm:$0xff]  }
 0x6cc   :  { %1715 = vmatprep.subr.bf16.mxu1 %v1799_v56 }
 0x6cf   :  { %1716 = vmatpush3.bf16.msra.mxu1 %v1799_v56 }
 0x6d2   :  { %1718 = vmatmul.mubr.msk.bf16.vlgmr.msra.gmra.mrb[20].mxu1 %vm318_vm8, %v920_v59  ;;  %v1803_v59 = vld [vmem:[%s2321_s17 + $0x28] sm:$0xff]  }
 0x6d3   :  { %1729 = vmatprep.mubr.msk.bf16.mxu1 %vm97_vm5, %v2046_v42 }
 0x79d   :  { %v912_v61 = vpop.f32.mrb[16].mxu1 }
 0x79e   :  { %v1711_v62 = vpop.f32.mrb[17].mxu1  ;;  %v2198_v2 = vadd.f32 %v1548_v35, %v912_v61 }
 0x79f   :  { %v915_v63 = vpop.f32.mrb[18].mxu1 }
 0x7a0   :  { %v2200_v3 = vadd.f32 %v1548_v35, %v915_v63  ;;  %v1712_v33 = vpop.f32.mrb[19].mxu1 }
 0x7a2   :  { %v987_v4 = vpack.c.bf16 %v2200_v3, %v2198_v2 }
 0x7a4   :  { %1721 = vmatprep.subr.bf16.mxu0 %v987_v4  ;;  %1727 = vmatprep.subr.bf16.mxu1 %v987_v4 }
 0x7a5   :  { %v1719_v17 = vpop.f32.mrb[20].mxu1  ;;  %1722 = vmatpush3.bf16.msra.mxu0 %v987_v4  ;;  %1728 = vmatpush3.bf16.msra.mxu1 %v987_v4 }
 0x7a6   :  { %v973_v42 = vpop.f32.mrb[21].mxu1  ;;  %1733 = vmatprep.subr.bf16.mxu0 %v1857_v5  ;;  %1741 = vmatprep.subr.bf16.mxu1 %v1857_v5 }
 0x7a7   :  { %1102 = vrot.lane.b32.xlu0 %v973_v42, %s1859_s9  ;;  %v1720_v9 = vpop.f32.mrb[22].mxu1 }
 0x7a8   :  { %v976_v10 = vpop.f32.mrb[23].mxu1  ;;  %1724 = vmatmul.mubr.msk.bf16.vlgmr.msra.gmra.mrb[20].mxu0 %vm97_vm5, %v2085_v8  ;;  %1730 = vmatmul.mubr.msk.bf16.vlgmr.msra.gmra.mrb[24].mxu1 %vm97_vm5, %v2083_v7 }
 0x7a9   :  { %1737 = vmatprep.mubr.msk.bf16.mxu0 %vm1858_vm0, %v1857_v5  ;;  %1745 = vmatprep.mubr.msk.bf16.mxu1 %vm1858_vm0, %v1857_v5 }
 0x7aa   :  { %1742 = vmatpush3.bf16.msra.mxu1 %v1800_v58 }
 0x7ab   :  { %1743 = vmatprep.subr.bf16.mxu1 %v1857_v5 }
 0x7ae   :  { %1744 = vmatpush3.bf16.msra.mxu1 %v1801_v40 }
 0x7af   :  { %1761 = vmatprep.subr.bf16.mxu1 %v1857_v5 }
 0x819   :  { %v1103_v7 = vpop.permute.xlu0 %1102 }
 0x87b   :  { %v1725_v11 = vpop.f32.mrb[20].mxu0  ;;  %v1731_v12 = vpop.f32.mrb[24].mxu1 }
 0x87c   :  { %v1022_v13 = vpop.f32.mrb[21].mxu0  ;;  %v1070_v14 = vpop.f32.mrb[25].mxu1 }
 0x87d   :  { %v1726_v15 = vpop.f32.mrb[22].mxu0  ;;  %1087 = vrot.lane.b32.xlu0 %v1070_v14, %s1860_s2  ;;  %v1732_v16 = vpop.f32.mrb[26].mxu1 }
 0x87e   :  { %v1025_v18 = vpop.f32.mrb[23].mxu0  ;;  %v1073_v19 = vpop.f32.mrb[27].mxu1 }
 0x87f   :  { %1089 = vrot.lane.b32.xlu1 %v1073_v19, %s1860_s2 }
 0x881   :  { %1091 = vrot.lane.b32.xlu0 %v1731_v12, %s1860_s2 }
 0x883   :  { %1104 = vrot.lane.b32.xlu1 %v976_v10, %s1859_s9 }
 0x885   :  { %1132 = vrot.lane.b32.xlu0 %v1070_v14, %s1861_s23 }
 0x887   :  { %1106 = vrot.lane.b32.xlu1 %v1719_v17, %s1859_s9 }
 0x889   :  { %1136 = vrot.lane.b32.xlu0 %v1731_v12, %s1861_s23 }
 0x88b   :  { %1134 = vrot.lane.b32.xlu1 %v1073_v19, %s1861_s23 }
 0x8ef   :  { %v1088_v8 = vpop.permute.xlu0 %1087 }
 0x8f0   :  { %v1096_v20 = vadd.f32 %v1088_v8, %v1022_v13  ;;  %v1497_v8 = vld [vmem:[%s2309_s5] ss:$0 sm:$0xff] }
 0x8f1   :  { %v1090_v21 = vpop.permute.xlu1 %1089 }
 0x8f2   :  { %v1111_v22 = vadd.f32 %v1103_v7, %v1096_v20  ;;  %v1097_v24 = vadd.f32 %v1090_v21, %v1025_v18 }
 0x8f3   :  { %v1092_v0 = vpop.permute.xlu0 %1091 }
 0x8f4   :  { %v1560_v23 = vmul.f32 -1.442695, %v1111_v22  ;;  %v1098_v1 = vadd.f32 %v1725_v11, %v1092_v0 }
 0x8f5   :  { %v1105_v47 = vpop.permute.xlu1 %1104 }
 0x8f6   :  { %1820 = vpow2.f32 %v1560_v23  ;;  %v1112_v51 = vadd.f32 %v1105_v47, %v1097_v24  ;;  %v1573_v23 = vld [vmem:[%s2322_s18 + $0x1] ss:$0 sm:$0xff] }
 0x8f7   :  { %v1133_v38 = vpop.permute.xlu0 %1132 }
 0x8f8   :  { %v1561_v25 = vmul.f32 -1.442695, %v1112_v51 }
 0x8f9   :  { %v1107_v26 = vpop.permute.xlu1 %1106 }
 0x8fa   :  { %1822 = vpow2.f32 %v1561_v25  ;;  %v1113_v27 = vadd.f32 %v1107_v26, %v1098_v1 }
 0x8fb   :  { %v1137_v46 = vpop.permute.xlu0 %1136 }
 0x8fc   :  { %v1562_v28 = vmul.f32 -1.442695, %v1113_v27 }
 0x8fd   :  { %v1135_v54 = vpop.permute.xlu1 %1134 }
 0x8fe   :  { %1824 = vpow2.f32 %v1562_v28  ;;  %v1806_v28 = vld [vmem:[%s2314_s10] sm:$0xff]  }
 0x900   :  { %v1821_v29 = vpop.eup %1820 }
 0x901   :  { %v1123_v30 = vadd.f32 1.0, %v1821_v29 }
 0x903   :  { %1826 = vrcp.f32 %v1123_v30 }
 0x904   :  { %v1823_v31 = vpop.eup %1822 }
 0x905   :  { %v1124_v32 = vadd.f32 1.0, %v1823_v31 }
 0x907   :  { %1828 = vrcp.f32 %v1124_v32 }
 0x908   :  { %v1825_v34 = vpop.eup %1824 }
 0x909   :  { %v1125_v36 = vadd.f32 1.0, %v1825_v34 }
 0x90b   :  { %1830 = vrcp.f32 %v1125_v36 }
 0x90d   :  { %v1827_v37 = vpop.eup %1826 }
 0x90e   :  { %v1141_v41 = vmul.f32 %v1827_v37, %v1133_v38  ;;  %v1575_v38 = vld [vmem:[%s2337_s29] ss:$0 sm:$0xff] }
 0x911   :  { %v1829_v39 = vpop.eup %1828 }
 0x912   :  { %v1142_v43 = vmul.f32 %v1829_v39, %v1135_v54 }
 0x914   :  { %v1144_v44 = vpack.c.bf16 %v1142_v43, %v1141_v41 }
 0x915   :  { %v1831_v45 = vpop.eup %1830 }
 0x916   :  { %v1143_v48 = vmul.f32 %v1831_v45, %v1137_v46  ;;  %1148 = vrot.lane.b32.xlu1 %v1144_v44, %s1860_s2 }
 0x918   :  { %v1145_v53 = vpack.c.bf16 %v1143_v48, %v1143_v48 }
 0x91a   :  { %1150 = vrot.lane.b32.xlu0 %v1145_v53, %s1860_s2  ;;  %1394 = vperm.xlu1 %1784, %v1391_v49  }
 0x988   :  { %v1149_v55 = vpop.permute.xlu1 %1148 }
 0x989   :  { %1734 = vmatpush3.bf16.msra.mxu0 %v1149_v55 }
 0x98a   :  { %1735 = vmatprep.subr.bf16.mxu0 %v1857_v5 }
 0x98c   :  { %v1151_v56 = vpop.permute.xlu0 %1150 }
 0x98d   :  { %v1154_v57 = vsel %vm162_vm1, %v1151_v56, 0  ;;  %vm272_vm1 = vcmp.eq.s32.totalorder %v2111_v60, %v1497_v8  ;;  %v1807_v60 = vld [vmem:[%s2314_s10 + $0x8] sm:$0xff]   ;;  %s1832_s10 = scalar_lea.vmem %s1474_s30, 32 }
 0x98e   :  { %1736 = vmatpush3.bf16.msra.mxu0 %v1154_v57  ;;  %v1498_v25 = vsel %vm272_vm1, 1.0, %v1857_v5  ;;  %p1833_p0 = scmp.ne.s32.totalorder %s1474_s30, %s1832_s10  ;;  %p1838_p2 = scmp.lt.s32.totalorder %s1832_s10, %s1832_s10 }
 0x98f   :  { %1749 = vmatprep.subr.bf16.mxu0 %v1857_v5  ;;  %v275_v27 = vpack.c.bf16 %v1498_v25, %v1498_v25 }
 0x990   :  { %p1839_p3 = por %p1838_p2, %p1837_p1 }
 0x991   :  { %1738 = vmatmul.mubr.msk.bf16.vlgmr.msra.gmra.mrb[24].mxu0 %vm609_vm15, %v2122_v6  ;;  %v1802_v6 = vld [vmem:[%s2321_s17 + $0x20] sm:$0xff]  }
 0x992   :  { %1757 = vmatprep.mubr.msk.bf16.mxu0 %vm1858_vm0, %v1857_v5  ;;  %1750 = vmatpush3.bf16.msra.mxu0 %v1802_v6  ;;  %p1840_p4 = pnand %p1839_p3, %p1833_p0 }
 0x993   :  { %1751 = vmatprep.subr.bf16.mxu0 %v1857_v5 }
 0x996   :  { %1752 = vmatpush3.bf16.msra.mxu0 %v1803_v59 }
 0x997   :  { %1753 = vmatprep.subr.bf16.mxu0 %v1857_v5 }
 0x999   :  { %v1395_v29 = vpop.permute.xlu1 %1394 }
 0xa64   :  { %v1190_v35 = vpop.f32.mrb[24].mxu0 }
 0xa65   :  { %v1197_v61 = vadd.f32 %v1190_v35, %v2198_v2  ;;  %v1739_v62 = vpop.f32.mrb[25].mxu0  ;;  %v1804_v2 = vld [vmem:[%s2321_s17 + $0x30] sm:$0xff]  }
 0xa66   :  { %v1193_v63 = vpop.f32.mrb[26].mxu0  ;;  %1754 = vmatpush3.bf16.msra.mxu0 %v1804_v2 }
 0xa67   :  { %v1199_v33 = vmax.f32 %v1197_v61, 0.0  ;;  %v1198_v4 = vadd.f32 %v1193_v63, %v2200_v3  ;;  %v1740_v17 = vpop.f32.mrb[27].mxu0  ;;  %1755 = vmatprep.subr.bf16.mxu0 %v1857_v5  ;;  %v1805_v3 = vld [vmem:[%s2321_s17 + $0x38] sm:$0xff]  }
 0xa69   :  { %v1200_v42 = vmax.f32 %v1198_v4, 0.0  ;;  %v1201_v9 = vadd.f32 %v1199_v33, %v2179_v50  ;;  %v1564_v50 = vld [vmem:[%s2320_s16 + $0x1] ss:$0 sm:$0xff] }
 0xa6a   :  { %1756 = vmatpush3.bf16.msra.mxu0 %v1805_v3 }
 0xa6b   :  { %v1202_v10 = vadd.f32 %v1200_v42, %v2181_v52 }
 0xa6d   :  { %v1203_v11 = vpack.c.bf16 %v1202_v10, %v1201_v9 }
 0xa6f   :  { %1746 = vmatmul.mubr.msk.bf16.vlgmr.msra.gmra.mrb[28].mxu1 %vm318_vm8, %v1203_v11 }
 0xa70   :  { %1763 = vmatprep.mubr.msk.bf16.mxu1 %vm1858_vm0, %v1857_v5 }
 0xb42   :  { %v1259_v52 = vpop.f32.mrb[28].mxu1 }
 0xb43   :  { %v1260_v12 = vadd.f32 %v1564_v50, %v1259_v52  ;;  %v1747_v13 = vpop.f32.mrb[29].mxu1 }
 0xb44   :  { %v1262_v14 = vpop.f32.mrb[30].mxu1 }
 0xb45   :  { %v1263_v15 = vadd.f32 %v1564_v50, %v1262_v14  ;;  %v1748_v16 = vpop.f32.mrb[31].mxu1  ;;  %v1266_v18 = vmax.f32 %v1260_v12, 0.0 }
 0xb47   :  { %v1267_v19 = vmax.f32 %v1263_v15, 0.0 }
 0xb49   :  { %v1268_v7 = vpack.c.bf16 %v1267_v19, %v1266_v18 }
 0xb4b   :  { %1758 = vmatmul.mubr.msk.bf16.vlgmr.msra.gmra.mrb[28].mxu0 %vm771_vm2, %v1268_v7 }
 0xc1e   :  { %v1330_v20 = vpop.f32.mrb[28].mxu0 }
 0xc1f   :  { %v1337_v21 = vadd.f32 %v1330_v20, %v1201_v9  ;;  %v1759_v22 = vpop.f32.mrb[29].mxu0 }
 0xc20   :  { %v1333_v24 = vpop.f32.mrb[30].mxu0 }
 0xc21   :  { %v1338_v0 = vadd.f32 %v1333_v24, %v1202_v10  ;;  %v1760_v47 = vpop.f32.mrb[31].mxu0  ;;  %v1345_v51 = vadd.f32 %v1573_v23, %v1337_v21 }
 0xc23   :  { %v1346_v1 = vadd.f32 %v1573_v23, %v1338_v0 }
 0xc25   :  { %v1347_v26 = vpack.c.bf16 %v1346_v1, %v1345_v51 }
 0xc27   :  { %1762 = vmatpush3.bf16.msra.mxu1 %v1347_v26 }
 0xc28   :  { %1767 = vmatprep.subr.bf16.mxu1 %v1857_v5 }
 0xc2a   :  { %1764 = vmatmul.mubr.msk.bf16.vlgmr.msra.gmra.mrb[32].mxu1 %vm97_vm5, %v275_v27 }
 0xc2b   :  { %1768 = vmatpush3.bf16.msra.mxu1 %v1806_v28  ;;  %1771 = vmatprep.mubr.msk.bf16.mxu1 %vm1858_vm0, %v1857_v5  ;;  %vm1465_vm0 = vcmask 25600  }
 0xc2c   :  { %1769 = vmatprep.subr.bf16.mxu1 %v1857_v5 }
 0xc2f   :  { %1770 = vmatpush3.bf16.msra.mxu1 %v1807_v60 }
 0xcfd   :  { %v1385_v30 = vpop.f32.mrb[32].mxu1 }
 0xcfe   :  { %v1397_v31 = vmul.f32 %v1395_v29, %v1385_v30  ;;  %v1765_v32 = vpop.f32.mrb[33].mxu1 }
 0xcff   :  { %v1388_v34 = vpop.f32.mrb[34].mxu1 }
 0xd00   :  { %v1398_v36 = vpack.c.bf16 %v1397_v31, %v1397_v31  ;;  %v1766_v37 = vpop.f32.mrb[35].mxu1 }
 0xd02   :  { %1772 = vmatmul.mubr.msk.bf16.vlgmr.msra.gmra.mrb[36].mxu1 %vm318_vm8, %v1398_v36 }
 0xdd5   :  { %v1459_v5 = vpop.f32.mrb[36].mxu1 }
 0xdd6   :  { %v1460_v39 = vadd.f32 %v1575_v38, %v1459_v5  ;;  %v1773_v54 = vpop.f32.mrb[37].mxu1 }
 0xdd7   :  { %v1462_v41 = vpop.f32.mrb[38].mxu1 }
 0xdd8   :  { %v1774_v43 = vpop.f32.mrb[39].mxu1  ;;  %1466 = vst.msk [vmem:[#allocation2] sm:$0x3] %vm1465_vm0, %v1460_v39 }
 0xdd9   :  { %1843 = shalt.err (!%p1840_p4)
}
 0xdda   :  { %s1844_s6 = scalar_lea.hbm %s2323_s19, 32 }
 0xddb   :  { %p1845_p5 = scmp.ne.s32.totalorder %s2323_s19, %s1844_s6  ;;  %p1848_p6 = scmp.lt.u32.totalorder %s1844_s6, %s2323_s19 }
 0xddd   :  { %p1850_p7 = pnand %p1848_p6, %p1845_p5 }
 0xddf   :  { %1853 = shalt.err (!%p1850_p7)
}
 0xde0   :  { %1476 = dma.vmem_to_hbm [thread:$0]  %s1474_s30, 32, %s2323_s19, [#allocation3]  }
 0xde1   :  { %1854 = dma.done.wait [#allocation3], 32  }
 0xde2   :  { %1855 = vsyncadd [#allocation3], 4294967264 }
 0xde3   :  { %1480 = vsyncpa [#allocation3], 1 }

</bundles_post_ra>
